<compile_context>
chip_gen: v5e
topology: v5e:2x2
jax: 0.10.0
libtpu: 0.0.40
codegen_flags: <defaults>
</compile_context>

<pallas_src>
import functools

import jax
import jax.numpy as jnp
from jax import lax
from jax.experimental import pallas as pl
from jax.experimental.pallas import tpu as pltpu


def _round_up(v, m):
    return (v + m - 1) // m * m


def _pick_tm(n, block_rows):
    """Row-block size: <= block_rows, <= round_up(n, 8), MXU-friendly when large."""
    n8 = _round_up(n, 8)
    tm = max(8, min(_round_up(block_rows, 8), n8))
    for align in (256, 128):          # MXU tile is 256 (v6e/v7x) / 128 (v5e)
        if tm >= align:
            tm = tm // align * align  # round down; never exceed the requested block
            break
    return tm


def _ori_triplet_kernel(x_ref, sqr_ref, sqc_ref, tcol_ref, trow_ref,   # inputs
                        hinge_ref, corr_ref,                           # outputs
                        *, margin, n, tm):
    i = pl.program_id(0)
    row0 = pl.multiple_of(i * tm, tm)

    # Row strip sliced from the resident matrix (no second HBM stream of x).
    xr = x_ref[pl.ds(row0, tm), :]                               # (tm, d_pad)

    # Gram strip on the MXU: (tm, d) x (n_pad, d) contracted over d -> (tm, n_pad).
    gram = lax.dot_general(xr, x_ref[...], (((1,), (1,)), ((), ())),
                           preferred_element_type=jnp.float32)   # (tm, n_pad) f32

    # score[i, j] = ||x_j||^2 - 2 <x_i, x_j>  (monotone in dist per row; the per-row
    # norm and the clamp+sqrt are applied only to the mined (tm, 1) values).
    # Padded columns carry ||x_j||^2 = +inf (poisoned in the wrapper), so they can
    # never win the hardest-negative min and are excluded from the positive max by
    # the non-colliding sentinel label.
    score = sqr_ref[...] - 2.0 * gram                            # (tm, n_pad)

    # Same-label mask via implicit (tm,1) == (1,n_pad) broadcast.
    mask = tcol_ref[...] == trow_ref[...]                        # (tm, n_pad) bool

    neg_inf = jnp.float32(-jnp.inf)
    pos_inf = jnp.float32(jnp.inf)
    pos = jnp.max(jnp.where(mask, score, neg_inf), axis=1, keepdims=True)   # (tm, 1)
    neg = jnp.min(jnp.where(mask, pos_inf, score), axis=1, keepdims=True)   # (tm, 1)

    sq_col = sqc_ref[...]                                        # (tm, 1) f32 (exact)

    # clamp(1e-12) + sqrt only on the mined values (2n EUP sqrts, never n^2).
    dist_ap = jnp.sqrt(jnp.maximum(pos + sq_col, 1e-12))         # hardest positive
    dist_an = jnp.sqrt(jnp.maximum(neg + sq_col, 1e-12))         # hardest negative

    row_valid = (row0 + lax.broadcasted_iota(jnp.int32, (tm, 1), 0)) < n

    hinge_ref[...] = jnp.where(row_valid,
                               jnp.maximum(dist_ap - dist_an + margin, 0.0),
                               0.0)
    corr_ref[...] = jnp.where(row_valid,
                              (dist_an >= dist_ap).astype(jnp.int32),
                              0)


def ori_triplet_loss(inputs, targets, margin=0.3, *, block_rows=256,
                     use_bf16_matmul=False):
    """Pallas implementation of OriTripletLoss.forward.

    Args:
      inputs:  (n, d) float feature matrix.
      targets: (n,) integer labels.
      block_rows: row-block size of the 1-D grid.
      use_bf16_matmul: store the resident feature matrix in bf16 (fast MXU path on
        all generations, halves resident VMEM). Norms stay f32; mining order can
        differ from the f32 reference only for near-ties.
    Returns:
      (loss: f32 scalar, correct: i32 scalar)
    """
    n, d = inputs.shape

    tm = _pick_tm(n, block_rows)
    n_pad = _round_up(n, tm)
    d_pad = _round_up(d, 128)

    x32 = inputs.astype(jnp.float32)
    t = targets.astype(jnp.int32)

    # Exact f32 column squared-norms, computed once by XLA (not per grid step).
    sq = jnp.sum(x32 * x32, axis=1)                              # (n,)

    x = x32.astype(jnp.bfloat16) if use_bf16_matmul else x32
    if d_pad != d:
        x = jnp.pad(x, ((0, 0), (0, d_pad - d)))
    if n_pad != n:
        pad_n = n_pad - n
        x = jnp.pad(x, ((0, pad_n), (0, 0)))
        sentinel = jnp.max(t) + 1                                # never equals a real label
        t = jnp.concatenate([t, jnp.full((pad_n,), sentinel, dtype=jnp.int32)])
        sq_row = jnp.concatenate([sq, jnp.full((pad_n,), jnp.inf, dtype=jnp.float32)])
        sq_col = jnp.concatenate([sq, jnp.zeros((pad_n,), dtype=jnp.float32)])
    else:
        sq_row = sq
        sq_col = sq

    t_col = t.reshape(n_pad, 1)
    t_row = t.reshape(1, n_pad)
    sq_row = sq_row.reshape(1, n_pad)
    sq_col = sq_col.reshape(n_pad, 1)

    # Generation-aware VMEM budget with compiler headroom.
    try:
        cap = getattr(pltpu.get_tpu_info(), "vmem_capacity_bytes", None) or (128 << 20)
    except Exception:
        cap = 128 << 20
    budget = max(32 << 20, min(cap - (8 << 20), 100 << 20))

    kernel = functools.partial(_ori_triplet_kernel, margin=float(margin), n=n, tm=tm)

    x_bytes = n_pad * d_pad * (2 if use_bf16_matmul else 4)
    small_bytes = 2 * n_pad * 4 + 16 * tm * 4 + 6 * tm * n_pad * 4

    def _call(single_buffer):
        resident_kw = {"pipeline_mode": pl.Buffered(1)} if single_buffer else {}
        est = x_bytes * (1 if single_buffer else 2) + small_bytes
        vmem_limit = int(min(budget, max(32 << 20, int(1.3 * est) + (4 << 20))))
        return pl.pallas_call(
            kernel,
            out_shape=(jax.ShapeDtypeStruct((n_pad, 1), jnp.float32),
                       jax.ShapeDtypeStruct((n_pad, 1), jnp.int32)),
            grid_spec=pltpu.PrefetchScalarGridSpec(
                num_scalar_prefetch=0,
                grid=(n_pad // tm,),
                in_specs=[
                    pl.BlockSpec((n_pad, d_pad), lambda i: (0, 0), **resident_kw),  # x (resident)
                    pl.BlockSpec((1, n_pad), lambda i: (0, 0), **resident_kw),      # ||x||^2 row
                    pl.BlockSpec((tm, 1), lambda i: (i, 0)),                        # ||x||^2 strip
                    pl.BlockSpec((tm, 1), lambda i: (i, 0)),                        # labels strip
                    pl.BlockSpec((1, n_pad), lambda i: (0, 0), **resident_kw),      # labels row
                ],
                out_specs=(
                    pl.BlockSpec((tm, 1), lambda i: (i, 0)),                        # hinge per row
                    pl.BlockSpec((tm, 1), lambda i: (i, 0)),                        # correct per row
                ),
            ),
            compiler_params=pltpu.CompilerParams(
                # Independent per-block outputs -> grid can shard across v7x megacores.
                dimension_semantics=("parallel",),
                vmem_limit_bytes=vmem_limit,
            ),
        )(x, sq_row, sq_col, t_col, t_row)

    try:
        hinge, corr = _call(single_buffer=True)
    except Exception:
        # Fallback if this JAX build rejects pipeline_mode=pl.Buffered(1).
        hinge, corr = _call(single_buffer=False)

    loss = jnp.sum(hinge) * jnp.float32(1.0 / n)
    correct = jnp.sum(corr)
    return loss, correct


def _reference(inputs, targets, margin=0.3):
    """Pure-JAX reference mirroring the PyTorch module."""
    sq = jnp.sum(inputs * inputs, axis=1, keepdims=True)
    dist2 = sq + sq.T - 2.0 * (inputs @ inputs.T)
    dist = jnp.sqrt(jnp.maximum(dist2, 1e-12))
    mask = targets[:, None] == targets[None, :]
    dist_ap = jnp.max(jnp.where(mask, dist, -jnp.inf), axis=1)
    dist_an = jnp.min(jnp.where(mask, jnp.inf, dist), axis=1)
    loss = jnp.mean(jnp.maximum(dist_ap - dist_an + margin, 0.0))
    correct = jnp.sum((dist_an >= dist_ap).astype(jnp.int32))
    return loss, correct


if __name__ == "__main__":
    key = jax.random.PRNGKey(0)

    # Test 1: batch=8, feat_dim=32; 4 identities x 2 samples (single grid step).
    n, d = 8, 32
    inputs = jax.random.normal(key, (n, d), dtype=jnp.float32)
    targets = jnp.array([0, 0, 1, 1, 2, 2, 3, 3], dtype=jnp.int32)

    loss, correct = ori_triplet_loss(inputs, targets, margin=0.3)
    jax.block_until_ready((loss, correct))
    ref_loss, ref_correct = _reference(inputs, targets, margin=0.3)
    assert jnp.allclose(loss, ref_loss, rtol=1e-4, atol=1e-4), (loss, ref_loss)
    assert int(correct) == int(ref_correct), (correct, ref_correct)

    # Test 2: batch=12 (not a multiple of the 8-row block) with block_rows=8 ->
    # exercises zero-padding masks, the +inf column poison and the parallel grid.
    key2 = jax.random.PRNGKey(1)
    n2, d2 = 12, 32
    inputs2 = jax.random.normal(key2, (n2, d2), dtype=jnp.float32)
    targets2 = jnp.array([0, 0, 0, 0, 1, 1, 1, 1, 2, 2, 2, 2], dtype=jnp.int32)

    loss2, correct2 = ori_triplet_loss(inputs2, targets2, margin=0.3, block_rows=8)
    jax.block_until_ready((loss2, correct2))
    ref_loss2, ref_correct2 = _reference(inputs2, targets2, margin=0.3)
    assert jnp.allclose(loss2, ref_loss2, rtol=1e-4, atol=1e-4), (loss2, ref_loss2)
    assert int(correct2) == int(ref_correct2), (correct2, ref_correct2)

    # Test 3: bf16 resident-matrix fast path (looser tolerance, mining can tie-flip).
    loss3, correct3 = ori_triplet_loss(inputs, targets, margin=0.3,
                                       use_bf16_matmul=True)
    jax.block_until_ready((loss3, correct3))
    assert jnp.allclose(loss3, ref_loss, rtol=3e-2, atol=3e-2), (loss3, ref_loss)

    print("KERNEL_OK")
</pallas_src>

<mosaic_0001>
module attributes {stable_mosaic.version = 11 : i64} {
  func.func @_ori_triplet_kernel(%arg0: i32, %arg1: memref<8x128xf32, #tpu.memory_space<vmem>>, %arg2: memref<1x8xf32, #tpu.memory_space<vmem>>, %arg3: memref<8x1xf32, #tpu.memory_space<vmem>>, %arg4: memref<8x1xi32, #tpu.memory_space<vmem>>, %arg5: memref<1x8xi32, #tpu.memory_space<vmem>>, %arg6: memref<8x1xf32, #tpu.memory_space<vmem>>, %arg7: memref<8x1xi32, #tpu.memory_space<vmem>>) attributes {dimension_semantics = [#tpu.dimension_semantics<parallel>], iteration_bounds = array<i64: 1>, scalar_prefetch = 0 : i64, scratch_operands = 0 : i64, tpu.core_type = #tpu.core_type<tc>, window_params = [{pipeline_mode = #tpu.pipeline_mode<synchronous>, transform_indices = @transform_0, window_bounds = array<i64: 8, 128>}, {pipeline_mode = #tpu.pipeline_mode<synchronous>, transform_indices = @transform_1, window_bounds = array<i64: 1, 8>}, {transform_indices = @transform_2, window_bounds = array<i64: 8, 1>}, {transform_indices = @transform_3, window_bounds = array<i64: 8, 1>}, {pipeline_mode = #tpu.pipeline_mode<synchronous>, transform_indices = @transform_4, window_bounds = array<i64: 1, 8>}, {transform_indices = @transform_5, window_bounds = array<i64: 8, 1>}, {transform_indices = @transform_6, window_bounds = array<i64: 8, 1>}]} {
    %c8_i32 = arith.constant 8 : i32
    %0 = arith.muli %arg0, %c8_i32 : i32
    %1 = tpu.assume_multiple %0, 8 : i32
    %2 = arith.index_cast %1 : i32 to index
    %c0 = arith.constant 0 : index
    %3 = vector.load %arg1[%2, %c0] : memref<8x128xf32, #tpu.memory_space<vmem>>, vector<8x128xf32>
    %c0_0 = arith.constant 0 : index
    %c0_1 = arith.constant 0 : index
    %4 = vector.load %arg1[%c0_0, %c0_1] : memref<8x128xf32, #tpu.memory_space<vmem>>, vector<8x128xf32>
    %cst = arith.constant dense<0.000000e+00> : vector<8x8xf32>
    %5 = tpu.matmul %3, %4, %cst {dimension_numbers = #tpu.dot_dimension_numbers<[1], [1], [0], [0], [0, 0, 1, 0], [], []>} : vector<8x128xf32>, vector<8x128xf32>, vector<8x8xf32> -> vector<8x8xf32>
    %c0_2 = arith.constant 0 : index
    %c0_3 = arith.constant 0 : index
    %6 = vector.load %arg2[%c0_2, %c0_3] : memref<1x8xf32, #tpu.memory_space<vmem>>, vector<1x8xf32>
    %cst_4 = arith.constant 2.000000e+00 : f32
    %7 = vector.broadcast %cst_4 : f32 to vector<8x8xf32>
    %8 = arith.mulf %7, %5 : vector<8x8xf32>
    %9 = vector.broadcast %6 : vector<1x8xf32> to vector<8x8xf32>
    %10 = arith.subf %9, %8 : vector<8x8xf32>
    %c0_5 = arith.constant 0 : index
    %c0_6 = arith.constant 0 : index
    %11 = vector.load %arg4[%c0_5, %c0_6] : memref<8x1xi32, #tpu.memory_space<vmem>>, vector<8x1xi32>
    %c0_7 = arith.constant 0 : index
    %c0_8 = arith.constant 0 : index
    %12 = vector.load %arg5[%c0_7, %c0_8] : memref<1x8xi32, #tpu.memory_space<vmem>>, vector<1x8xi32>
    %13 = vector.broadcast %11 : vector<8x1xi32> to vector<8x8xi32>
    %14 = vector.broadcast %12 : vector<1x8xi32> to vector<8x8xi32>
    %15 = arith.cmpi eq, %13, %14 : vector<8x8xi32>
    %cst_9 = arith.constant 0xFF800000 : f32
    %16 = vector.broadcast %cst_9 : f32 to vector<8x8xf32>
    %17 = arith.select %15, %10, %16 : vector<8x8xi1>, vector<8x8xf32>
    %cst_10 = arith.constant dense<0xFF800000> : vector<8xf32>
    %18 = vector.multi_reduction <maximumf>, %17, %cst_10 [1] : vector<8x8xf32> to vector<8xf32>
    %19 = vector.shape_cast %18 : vector<8xf32> to vector<8x1xf32>
    %cst_11 = arith.constant 0x7F800000 : f32
    %20 = vector.broadcast %cst_11 : f32 to vector<8x8xf32>
    %21 = arith.select %15, %20, %10 : vector<8x8xi1>, vector<8x8xf32>
    %cst_12 = arith.constant dense<0x7F800000> : vector<8xf32>
    %22 = vector.multi_reduction <minimumf>, %21, %cst_12 [1] : vector<8x8xf32> to vector<8xf32>
    %23 = vector.shape_cast %22 : vector<8xf32> to vector<8x1xf32>
    %c0_13 = arith.constant 0 : index
    %c0_14 = arith.constant 0 : index
    %24 = vector.load %arg3[%c0_13, %c0_14] : memref<8x1xf32, #tpu.memory_space<vmem>>, vector<8x1xf32>
    %25 = arith.addf %19, %24 : vector<8x1xf32>
    %cst_15 = arith.constant 9.99999996E-13 : f32
    %26 = vector.broadcast %cst_15 : f32 to vector<8x1xf32>
    %27 = arith.maximumf %25, %26 : vector<8x1xf32>
    %28 = math.sqrt %27 : vector<8x1xf32>
    %29 = arith.addf %23, %24 : vector<8x1xf32>
    %cst_16 = arith.constant 9.99999996E-13 : f32
    %30 = vector.broadcast %cst_16 : f32 to vector<8x1xf32>
    %31 = arith.maximumf %29, %30 : vector<8x1xf32>
    %32 = math.sqrt %31 : vector<8x1xf32>
    %33 = tpu.iota {dimensions = array<i32: 0>} : vector<8x1xi32>
    %34 = vector.broadcast %1 : i32 to vector<8x1xi32>
    %35 = arith.addi %34, %33 : vector<8x1xi32>
    %c8_i32_17 = arith.constant 8 : i32
    %36 = vector.broadcast %c8_i32_17 : i32 to vector<8x1xi32>
    %37 = arith.cmpi slt, %35, %36 : vector<8x1xi32>
    %38 = arith.subf %28, %32 : vector<8x1xf32>
    %cst_18 = arith.constant 3.000000e-01 : f32
    %39 = vector.broadcast %cst_18 : f32 to vector<8x1xf32>
    %40 = arith.addf %38, %39 : vector<8x1xf32>
    %cst_19 = arith.constant 0.000000e+00 : f32
    %41 = vector.broadcast %cst_19 : f32 to vector<8x1xf32>
    %42 = arith.maximumf %40, %41 : vector<8x1xf32>
    %cst_20 = arith.constant 0.000000e+00 : f32
    %43 = vector.broadcast %cst_20 : f32 to vector<8x1xf32>
    %44 = arith.select %37, %42, %43 : vector<8x1xi1>, vector<8x1xf32>
    %c0_21 = arith.constant 0 : index
    %c0_22 = arith.constant 0 : index
    %45 = vector.load %arg6[%c0_21, %c0_22] : memref<8x1xf32, #tpu.memory_space<vmem>>, vector<8x1xf32>
    tpu.vector_store %arg6[%c0_21, %c0_22], %44 {strides = array<i32>} : memref<8x1xf32, #tpu.memory_space<vmem>>, vector<8x1xf32>,
    %46 = arith.cmpf oge, %32, %28 : vector<8x1xf32>
    %47 = arith.extui %46 : vector<8x1xi1> to vector<8x1xi32>
    %c0_i32 = arith.constant 0 : i32
    %48 = vector.broadcast %c0_i32 : i32 to vector<8x1xi32>
    %49 = arith.select %37, %47, %48 : vector<8x1xi1>, vector<8x1xi32>
    %c0_23 = arith.constant 0 : index
    %c0_24 = arith.constant 0 : index
    %50 = vector.load %arg7[%c0_23, %c0_24] : memref<8x1xi32, #tpu.memory_space<vmem>>, vector<8x1xi32>
    tpu.vector_store %arg7[%c0_23, %c0_24], %49 {strides = array<i32>} : memref<8x1xi32, #tpu.memory_space<vmem>>, vector<8x1xi32>,
    return
  }
  func.func @transform_0(%arg0: i32) -> (i32, i32) {
    %c0_i32 = arith.constant 0 : i32
    %c0_i32_0 = arith.constant 0 : i32
    %c0_i32_1 = arith.constant 0 : i32
    return %c0_i32, %c0_i32_0 : i32, i32
  }
  func.func @transform_1(%arg0: i32) -> (i32, i32) {
    %c0_i32 = arith.constant 0 : i32
    %c0_i32_0 = arith.constant 0 : i32
    %c0_i32_1 = arith.constant 0 : i32
    return %c0_i32, %c0_i32_0 : i32, i32
  }
  func.func @transform_2(%arg0: i32) -> (i32, i32) {
    %c0_i32 = arith.constant 0 : i32
    %c0_i32_0 = arith.constant 0 : i32
    return %arg0, %c0_i32 : i32, i32
  }
  func.func @transform_3(%arg0: i32) -> (i32, i32) {
    %c0_i32 = arith.constant 0 : i32
    %c0_i32_0 = arith.constant 0 : i32
    return %arg0, %c0_i32 : i32, i32
  }
  func.func @transform_4(%arg0: i32) -> (i32, i32) {
    %c0_i32 = arith.constant 0 : i32
    %c0_i32_0 = arith.constant 0 : i32
    %c0_i32_1 = arith.constant 0 : i32
    return %c0_i32, %c0_i32_0 : i32, i32
  }
  func.func @transform_5(%arg0: i32) -> (i32, i32) {
    %c0_i32 = arith.constant 0 : i32
    %c0_i32_0 = arith.constant 0 : i32
    return %arg0, %c0_i32 : i32, i32
  }
  func.func @transform_6(%arg0: i32) -> (i32, i32) {
    %c0_i32 = arith.constant 0 : i32
    %c0_i32_0 = arith.constant 0 : i32
    return %arg0, %c0_i32 : i32, i32
  }
}

module attributes {stable_mosaic.version = 11 : i64} {
  func.func @_ori_triplet_kernel(%arg0: i32, %arg1: memref<8x128xf32, #tpu.memory_space<vmem>>, %arg2: memref<1x8xf32, #tpu.memory_space<vmem>>, %arg3: memref<8x1xf32, #tpu.memory_space<vmem>>, %arg4: memref<8x1xi32, #tpu.memory_space<vmem>>, %arg5: memref<1x8xi32, #tpu.memory_space<vmem>>, %arg6: memref<8x1xf32, #tpu.memory_space<vmem>>, %arg7: memref<8x1xi32, #tpu.memory_space<vmem>>) attributes {dimension_semantics = [#tpu.dimension_semantics<parallel>], iteration_bounds = array<i64: 1>, scalar_prefetch = 0 : i64, scratch_operands = 0 : i64, tpu.core_type = #tpu.core_type<tc>, window_params = [{pipeline_mode = #tpu.pipeline_mode<synchronous>, transform_indices = @transform_0, window_bounds = array<i64: 8, 128>}, {pipeline_mode = #tpu.pipeline_mode<synchronous>, transform_indices = @transform_1, window_bounds = array<i64: 1, 8>}, {transform_indices = @transform_2, window_bounds = array<i64: 8, 1>}, {transform_indices = @transform_3, window_bounds = array<i64: 8, 1>}, {pipeline_mode = #tpu.pipeline_mode<synchronous>, transform_indices = @transform_4, window_bounds = array<i64: 1, 8>}, {transform_indices = @transform_5, window_bounds = array<i64: 8, 1>}, {transform_indices = @transform_6, window_bounds = array<i64: 8, 1>}]} {
    %c8_i32 = arith.constant 8 : i32
    %0 = arith.muli %arg0, %c8_i32 : i32
    %1 = tpu.assume_multiple %0, 8 : i32
    %2 = arith.index_cast %1 : i32 to index
    %c0 = arith.constant 0 : index
    %3 = vector.load %arg1[%2, %c0] : memref<8x128xf32, #tpu.memory_space<vmem>>, vector<8x128xf32>
    %c0_0 = arith.constant 0 : index
    %c0_1 = arith.constant 0 : index
    %4 = vector.load %arg1[%c0_0, %c0_1] : memref<8x128xf32, #tpu.memory_space<vmem>>, vector<8x128xf32>
    %cst = arith.constant dense<0.000000e+00> : vector<8x8xf32>
    %5 = tpu.matmul %3, %4, %cst {dimension_numbers = #tpu.dot_dimension_numbers<[1], [1], [0], [0], [0, 0, 1, 0], [], []>} : vector<8x128xf32>, vector<8x128xf32>, vector<8x8xf32> -> vector<8x8xf32>
    %c0_2 = arith.constant 0 : index
    %c0_3 = arith.constant 0 : index
    %6 = vector.load %arg2[%c0_2, %c0_3] : memref<1x8xf32, #tpu.memory_space<vmem>>, vector<1x8xf32>
    %cst_4 = arith.constant 2.000000e+00 : f32
    %7 = vector.broadcast %cst_4 : f32 to vector<8x8xf32>
    %8 = arith.mulf %7, %5 : vector<8x8xf32>
    %9 = vector.broadcast %6 : vector<1x8xf32> to vector<8x8xf32>
    %10 = arith.subf %9, %8 : vector<8x8xf32>
    %c0_5 = arith.constant 0 : index
    %c0_6 = arith.constant 0 : index
    %11 = vector.load %arg4[%c0_5, %c0_6] : memref<8x1xi32, #tpu.memory_space<vmem>>, vector<8x1xi32>
    %c0_7 = arith.constant 0 : index
    %c0_8 = arith.constant 0 : index
    %12 = vector.load %arg5[%c0_7, %c0_8] : memref<1x8xi32, #tpu.memory_space<vmem>>, vector<1x8xi32>
    %13 = vector.broadcast %11 : vector<8x1xi32> to vector<8x8xi32>
    %14 = vector.broadcast %12 : vector<1x8xi32> to vector<8x8xi32>
    %15 = arith.cmpi eq, %13, %14 : vector<8x8xi32>
    %cst_9 = arith.constant 0xFF800000 : f32
    %16 = vector.broadcast %cst_9 : f32 to vector<8x8xf32>
    %17 = arith.select %15, %10, %16 : vector<8x8xi1>, vector<8x8xf32>
    %cst_10 = arith.constant dense<0xFF800000> : vector<8xf32>
    %18 = vector.multi_reduction <maximumf>, %17, %cst_10 [1] : vector<8x8xf32> to vector<8xf32>
    %19 = vector.shape_cast %18 : vector<8xf32> to vector<8x1xf32>
    %cst_11 = arith.constant 0x7F800000 : f32
    %20 = vector.broadcast %cst_11 : f32 to vector<8x8xf32>
    %21 = arith.select %15, %20, %10 : vector<8x8xi1>, vector<8x8xf32>
    %cst_12 = arith.constant dense<0x7F800000> : vector<8xf32>
    %22 = vector.multi_reduction <minimumf>, %21, %cst_12 [1] : vector<8x8xf32> to vector<8xf32>
    %23 = vector.shape_cast %22 : vector<8xf32> to vector<8x1xf32>
    %c0_13 = arith.constant 0 : index
    %c0_14 = arith.constant 0 : index
    %24 = vector.load %arg3[%c0_13, %c0_14] : memref<8x1xf32, #tpu.memory_space<vmem>>, vector<8x1xf32>
    %25 = arith.addf %19, %24 : vector<8x1xf32>
    %cst_15 = arith.constant 9.99999996E-13 : f32
    %26 = vector.broadcast %cst_15 : f32 to vector<8x1xf32>
    %27 = arith.maximumf %25, %26 : vector<8x1xf32>
    %28 = math.sqrt %27 : vector<8x1xf32>
    %29 = arith.addf %23, %24 : vector<8x1xf32>
    %cst_16 = arith.constant 9.99999996E-13 : f32
    %30 = vector.broadcast %cst_16 : f32 to vector<8x1xf32>
    %31 = arith.maximumf %29, %30 : vector<8x1xf32>
    %32 = math.sqrt %31 : vector<8x1xf32>
    %33 = tpu.iota {dimensions = array<i32: 0>} : vector<8x1xi32>
    %34 = vector.broadcast %1 : i32 to vector<8x1xi32>
    %35 = arith.addi %34, %33 : vector<8x1xi32>
    %c8_i32_17 = arith.constant 8 : i32
    %36 = vector.broadcast %c8_i32_17 : i32 to vector<8x1xi32>
    %37 = arith.cmpi slt, %35, %36 : vector<8x1xi32>
    %38 = arith.subf %28, %32 : vector<8x1xf32>
    %cst_18 = arith.constant 3.000000e-01 : f32
    %39 = vector.broadcast %cst_18 : f32 to vector<8x1xf32>
    %40 = arith.addf %38, %39 : vector<8x1xf32>
    %cst_19 = arith.constant 0.000000e+00 : f32
    %41 = vector.broadcast %cst_19 : f32 to vector<8x1xf32>
    %42 = arith.maximumf %40, %41 : vector<8x1xf32>
    %cst_20 = arith.constant 0.000000e+00 : f32
    %43 = vector.broadcast %cst_20 : f32 to vector<8x1xf32>
    %44 = arith.select %37, %42, %43 : vector<8x1xi1>, vector<8x1xf32>
    %c0_21 = arith.constant 0 : index
    %c0_22 = arith.constant 0 : index
    %45 = vector.load %arg6[%c0_21, %c0_22] : memref<8x1xf32, #tpu.memory_space<vmem>>, vector<8x1xf32>
    tpu.vector_store %arg6[%c0_21, %c0_22], %44 {strides = array<i32>} : memref<8x1xf32, #tpu.memory_space<vmem>>, vector<8x1xf32>,
    %46 = arith.cmpf oge, %32, %28 : vector<8x1xf32>
    %47 = arith.extui %46 : vector<8x1xi1> to vector<8x1xi32>
    %c0_i32 = arith.constant 0 : i32
    %48 = vector.broadcast %c0_i32 : i32 to vector<8x1xi32>
    %49 = arith.select %37, %47, %48 : vector<8x1xi1>, vector<8x1xi32>
    %c0_23 = arith.constant 0 : index
    %c0_24 = arith.constant 0 : index
    %50 = vector.load %arg7[%c0_23, %c0_24] : memref<8x1xi32, #tpu.memory_space<vmem>>, vector<8x1xi32>
    tpu.vector_store %arg7[%c0_23, %c0_24], %49 {strides = array<i32>} : memref<8x1xi32, #tpu.memory_space<vmem>>, vector<8x1xi32>,
    return
  }
  func.func @transform_0(%arg0: i32) -> (i32, i32) {
    %c0_i32 = arith.constant 0 : i32
    %c0_i32_0 = arith.constant 0 : i32
    %c0_i32_1 = arith.constant 0 : i32
    return %c0_i32, %c0_i32_0 : i32, i32
  }
  func.func @transform_1(%arg0: i32) -> (i32, i32) {
    %c0_i32 = arith.constant 0 : i32
    %c0_i32_0 = arith.constant 0 : i32
    %c0_i32_1 = arith.constant 0 : i32
    return %c0_i32, %c0_i32_0 : i32, i32
  }
  func.func @transform_2(%arg0: i32) -> (i32, i32) {
    %c0_i32 = arith.constant 0 : i32
    %c0_i32_0 = arith.constant 0 : i32
    return %arg0, %c0_i32 : i32, i32
  }
  func.func @transform_3(%arg0: i32) -> (i32, i32) {
    %c0_i32 = arith.constant 0 : i32
    %c0_i32_0 = arith.constant 0 : i32
    return %arg0, %c0_i32 : i32, i32
  }
  func.func @transform_4(%arg0: i32) -> (i32, i32) {
    %c0_i32 = arith.constant 0 : i32
    %c0_i32_0 = arith.constant 0 : i32
    %c0_i32_1 = arith.constant 0 : i32
    return %c0_i32, %c0_i32_0 : i32, i32
  }
  func.func @transform_5(%arg0: i32) -> (i32, i32) {
    %c0_i32 = arith.constant 0 : i32
    %c0_i32_0 = arith.constant 0 : i32
    return %arg0, %c0_i32 : i32, i32
  }
  func.func @transform_6(%arg0: i32) -> (i32, i32) {
    %c0_i32 = arith.constant 0 : i32
    %c0_i32_0 = arith.constant 0 : i32
    return %arg0, %c0_i32 : i32, i32
  }
}

</mosaic_0001>

<bundles_post_ra>
// kernel: tpu_custom_call.1
= control target key start
LH: loop header
LB: loop body
LE: loop exit
PB: predicated region body
PF: predicated region fallthrough
CT: control target
= control target key end

     0   :  { %v128_v1 = vmov 0   ;;  %vm60_vm1 = vcmask 64512   ;;  %vm106_vm6 = vcmask 7168   ;;  %s185_s0 = inlined_call_operand.vmem [shape: f32[8,128], index: 0, kind: input, shape index: {}]   ;;  %s186_s3 = inlined_call_operand.vmem [shape: s32[8,1], index: 3, kind: input, shape index: {}]   ;;  %s187_s1 = inlined_call_operand.vmem [shape: f32[1,8], index: 1, kind: input, shape index: {}]   ;;  %s188_s4 = inlined_call_operand.vmem [shape: s32[1,8], index: 4, kind: input, shape index: {}]   ;;  %s189_s2 = inlined_call_operand.vmem [shape: f32[8,1], index: 2, kind: input, shape index: {}]   ;;  %s190_s6 = inlined_call_operand.vmem [shape: s32[8,1], index: 6, kind: output, shape index: {1}]   ;;  %s191_s5 = inlined_call_operand.vmem [shape: f32[8,1], index: 5, kind: output, shape index: {0}]  }
   0x1   :  { %v25_v0 = vld [vmem:[%s185_s0] sm:$0xff]  ;;  %121 = vset.pattern.permute.xlu0 %v128_v1 }
   0x2   :  { %v52_v2 = vld [vmem:[%s186_s3] sm:$0xff]  ;;  %41 = vmatpush.xpose.msra.mxu0 %v25_v0 }
   0x3   :  { %55 = vperm.xlu0 %121, %v52_v2   ;;  %v123_v3 = vld [vmem:[%s188_s4] ss:$0 sm:$0xff] }
   0x4   :  { %v122_v4 = vld [vmem:[%s187_s1] ss:$0 sm:$0xff] }
   0x5   :  { %42 = vmatmul.f32.vlgmr.msra.gmra.mxu0 %v25_v0  ;;  %v68_v13 = vld [vmem:[%s189_s2] sm:$0xff] }
  0x75   :  { %v56_v5 = vpop.permute.xlu0 %55 }
  0x76   :  { %vm58_vm0 = vcmp.eq.s32.totalorder %v56_v5, %v123_v3 }
  0x82   :  { %v43_v6 = vpop.f32.mrf.mxu0 }
  0x83   :  { %v47_v7 = vmul.f32 2.0, %v43_v6 }
  0x85   :  { %v51_v8 = vsub.f32 %v122_v4, %v47_v7 }
  0x87   :  { %v64_v9 = vsel %vm58_vm0, inf, %v51_v8  ;;  %v59_v10 = vsel %vm58_vm0, %v51_v8, -inf }
  0x88   :  { %v65_v11 = vsel %vm60_vm1, %v64_v9, inf  ;;  %v61_v12 = vsel %vm60_vm1, %v59_v10, -inf }
  0x89   :  { %66 = vmin.xlane.f32.xlu1 %v65_v11  ;;  %62 = vmax.xlane.f32.xlu0 %v61_v12 }
  0xfc   :  { %v67_v14 = vpop.xlane.xlu1 %66  ;;  %v63_v15 = vpop.xlane.xlu0 %62 }
  0xfd   :  { %v83_v16 = vadd.f32 %v68_v13, %v67_v14  ;;  %v69_v17 = vadd.f32 %v68_v13, %v63_v15 }
  0xff   :  { %v84_v18 = vmax.f32 %v83_v16, 1e-12  ;;  %v70_v19 = vmax.f32 %v69_v17, 1e-12 }
 0x101   :  { %124 = vrsqrt.f32 %v84_v18  ;;  %vm92_vm2 = vcmp.eq.f32.partialorder %v84_v18, inf  ;;  %v95_v33 = vand.u32 2147483648, %v84_v18  ;;  %vm94_vm3 = vcmp.eq.f32.partialorder %v84_v18, 0.0 }
 0x102   :  { %126 = vrsqrt.f32 %v70_v19  ;;  %vm78_vm4 = vcmp.eq.f32.partialorder %v70_v19, inf  ;;  %v81_v36 = vand.u32 2147483648, %v70_v19  ;;  %vm80_vm5 = vcmp.eq.f32.partialorder %v70_v19, 0.0 }
 0x107   :  { %v125_v20 = vpop.eup %124 }
 0x108   :  { %v127_v21 = vpop.eup %126  ;;  %v86_v22 = vmul.f32 %v125_v20, %v84_v18 }
 0x109   :  { %v72_v23 = vmul.f32 %v127_v21, %v70_v19 }
 0x10a   :  { %v87_v24 = vmul.f32 %v125_v20, %v86_v22 }
 0x10b   :  { %v73_v25 = vmul.f32 %v127_v21, %v72_v23 }
 0x10c   :  { %v88_v26 = vmul.f32 0.5, %v87_v24 }
 0x10d   :  { %v74_v27 = vmul.f32 0.5, %v73_v25 }
 0x10e   :  { %v89_v28 = vsub.f32 1.5, %v88_v26 }
 0x10f   :  { %v75_v29 = vsub.f32 1.5, %v74_v27 }
 0x110   :  { %v90_v30 = vmul.f32 %v125_v20, %v89_v28 }
 0x111   :  { %v76_v31 = vmul.f32 %v127_v21, %v75_v29 }
 0x112   :  { %v91_v32 = vmul.f32 %v90_v30, %v84_v18 }
 0x113   :  { %v77_v34 = vmul.f32 %v76_v31, %v70_v19 }
 0x114   :  { %v93_v35 = vsel %vm92_vm2, %v84_v18, %v91_v32 }
 0x115   :  { %v96_v37 = vsel %vm94_vm3, %v95_v33, %v93_v35  ;;  %v79_v38 = vsel %vm78_vm4, %v70_v19, %v77_v34 }
 0x116   :  { %v82_v39 = vsel %vm80_vm5, %v81_v36, %v79_v38 }
 0x117   :  { %v102_v40 = vsub.f32 %v82_v39, %v96_v37  ;;  %vm108_vm7 = vcmp.ge.f32.partialorder %v96_v37, %v82_v39 }
 0x118   :  { %v109_v41 = vsel %vm108_vm7, 1, %v128_v1 }
 0x119   :  { %v103_v42 = vadd.f32 0.3, %v102_v40  ;;  %111 = vst.msk [vmem:[%s190_s6] sm:$0xff] %vm106_vm6, %v109_v41 }
 0x11b   :  { %v104_v43 = vmax.f32 %v103_v42, 0.0 }
 0x11d   :  { %107 = vst.msk [vmem:[%s191_s5] sm:$0xff] %vm106_vm6, %v104_v43 }

// kernel: tpu_custom_call.1
= control target key start
LH: loop header
LB: loop body
LE: loop exit
PB: predicated region body
PF: predicated region fallthrough
CT: control target
= control target key end

     0   :  { %v128_v1 = vmov 0   ;;  %vm60_vm1 = vcmask 64512   ;;  %vm106_vm6 = vcmask 7168   ;;  %s185_s0 = inlined_call_operand.vmem [shape: f32[8,128], index: 0, kind: input, shape index: {}]   ;;  %s186_s3 = inlined_call_operand.vmem [shape: s32[8,1], index: 3, kind: input, shape index: {}]   ;;  %s187_s1 = inlined_call_operand.vmem [shape: f32[1,8], index: 1, kind: input, shape index: {}]   ;;  %s188_s4 = inlined_call_operand.vmem [shape: s32[1,8], index: 4, kind: input, shape index: {}]   ;;  %s189_s2 = inlined_call_operand.vmem [shape: f32[8,1], index: 2, kind: input, shape index: {}]   ;;  %s190_s6 = inlined_call_operand.vmem [shape: s32[8,1], index: 6, kind: output, shape index: {1}]   ;;  %s191_s5 = inlined_call_operand.vmem [shape: f32[8,1], index: 5, kind: output, shape index: {0}]  }
   0x1   :  { %v25_v0 = vld [vmem:[%s185_s0] sm:$0xff]  ;;  %121 = vset.pattern.permute.xlu0 %v128_v1 }
   0x2   :  { %v52_v2 = vld [vmem:[%s186_s3] sm:$0xff]  ;;  %41 = vmatpush.xpose.msra.mxu0 %v25_v0 }
   0x3   :  { %55 = vperm.xlu0 %121, %v52_v2   ;;  %v123_v3 = vld [vmem:[%s188_s4] ss:$0 sm:$0xff] }
   0x4   :  { %v122_v4 = vld [vmem:[%s187_s1] ss:$0 sm:$0xff] }
   0x5   :  { %42 = vmatmul.f32.vlgmr.msra.gmra.mxu0 %v25_v0  ;;  %v68_v13 = vld [vmem:[%s189_s2] sm:$0xff] }
  0x75   :  { %v56_v5 = vpop.permute.xlu0 %55 }
  0x76   :  { %vm58_vm0 = vcmp.eq.s32.totalorder %v56_v5, %v123_v3 }
  0x82   :  { %v43_v6 = vpop.f32.mrf.mxu0 }
  0x83   :  { %v47_v7 = vmul.f32 2.0, %v43_v6 }
  0x85   :  { %v51_v8 = vsub.f32 %v122_v4, %v47_v7 }
  0x87   :  { %v64_v9 = vsel %vm58_vm0, inf, %v51_v8  ;;  %v59_v10 = vsel %vm58_vm0, %v51_v8, -inf }
  0x88   :  { %v65_v11 = vsel %vm60_vm1, %v64_v9, inf  ;;  %v61_v12 = vsel %vm60_vm1, %v59_v10, -inf }
  0x89   :  { %66 = vmin.xlane.f32.xlu1 %v65_v11  ;;  %62 = vmax.xlane.f32.xlu0 %v61_v12 }
  0xfc   :  { %v67_v14 = vpop.xlane.xlu1 %66  ;;  %v63_v15 = vpop.xlane.xlu0 %62 }
  0xfd   :  { %v83_v16 = vadd.f32 %v68_v13, %v67_v14  ;;  %v69_v17 = vadd.f32 %v68_v13, %v63_v15 }
  0xff   :  { %v84_v18 = vmax.f32 %v83_v16, 1e-12  ;;  %v70_v19 = vmax.f32 %v69_v17, 1e-12 }
 0x101   :  { %124 = vrsqrt.f32 %v84_v18  ;;  %vm92_vm2 = vcmp.eq.f32.partialorder %v84_v18, inf  ;;  %v95_v33 = vand.u32 2147483648, %v84_v18  ;;  %vm94_vm3 = vcmp.eq.f32.partialorder %v84_v18, 0.0 }
 0x102   :  { %126 = vrsqrt.f32 %v70_v19  ;;  %vm78_vm4 = vcmp.eq.f32.partialorder %v70_v19, inf  ;;  %v81_v36 = vand.u32 2147483648, %v70_v19  ;;  %vm80_vm5 = vcmp.eq.f32.partialorder %v70_v19, 0.0 }
 0x107   :  { %v125_v20 = vpop.eup %124 }
 0x108   :  { %v127_v21 = vpop.eup %126  ;;  %v86_v22 = vmul.f32 %v125_v20, %v84_v18 }
 0x109   :  { %v72_v23 = vmul.f32 %v127_v21, %v70_v19 }
 0x10a   :  { %v87_v24 = vmul.f32 %v125_v20, %v86_v22 }
 0x10b   :  { %v73_v25 = vmul.f32 %v127_v21, %v72_v23 }
 0x10c   :  { %v88_v26 = vmul.f32 0.5, %v87_v24 }
 0x10d   :  { %v74_v27 = vmul.f32 0.5, %v73_v25 }
 0x10e   :  { %v89_v28 = vsub.f32 1.5, %v88_v26 }
 0x10f   :  { %v75_v29 = vsub.f32 1.5, %v74_v27 }
 0x110   :  { %v90_v30 = vmul.f32 %v125_v20, %v89_v28 }
 0x111   :  { %v76_v31 = vmul.f32 %v127_v21, %v75_v29 }
 0x112   :  { %v91_v32 = vmul.f32 %v90_v30, %v84_v18 }
 0x113   :  { %v77_v34 = vmul.f32 %v76_v31, %v70_v19 }
 0x114   :  { %v93_v35 = vsel %vm92_vm2, %v84_v18, %v91_v32 }
 0x115   :  { %v96_v37 = vsel %vm94_vm3, %v95_v33, %v93_v35  ;;  %v79_v38 = vsel %vm78_vm4, %v70_v19, %v77_v34 }
 0x116   :  { %v82_v39 = vsel %vm80_vm5, %v81_v36, %v79_v38 }
 0x117   :  { %v102_v40 = vsub.f32 %v82_v39, %v96_v37  ;;  %vm108_vm7 = vcmp.ge.f32.partialorder %v96_v37, %v82_v39 }
 0x118   :  { %v109_v41 = vsel %vm108_vm7, 1, %v128_v1 }
 0x119   :  { %v103_v42 = vadd.f32 0.3, %v102_v40  ;;  %111 = vst.msk [vmem:[%s190_s6] sm:$0xff] %vm106_vm6, %v109_v41 }
 0x11b   :  { %v104_v43 = vmax.f32 %v103_v42, 0.0 }
 0x11d   :  { %107 = vst.msk [vmem:[%s191_s5] sm:$0xff] %vm106_vm6, %v104_v43 }

</bundles_post_ra>
